<compile_context>
chip_gen: v5e
topology: v5e:2x2
jax: 0.10.0
libtpu: 0.0.40
codegen_flags: <defaults>
</compile_context>

<pallas_src>
import jax
import jax.numpy as jnp
from jax.experimental import pallas as pl
from jax.experimental.pallas import tpu as pltpu


# --------------------------------------------------------------------------
# Pass 1: tiled global-average-pool  +  1x1 conv  +  folded BN  +  ReLU
# --------------------------------------------------------------------------
def _pool_conv_bn_relu_kernel(x_ref, w_ref, scale_ref, shift_ref, y_ref, acc_ref):
    # x_ref:     (1, C_in, TILE_HW)  lane-dense spatial chunk
    # w_ref:     (C_in, C_out)       1x1 conv weight, pre-transposed, pre-scaled by 1/(H*W), f32
    # scale_ref: (1, C_out)          folded BN scale = gamma / sqrt(var + eps)
    # shift_ref: (1, C_out)          folded BN shift = beta - mean * scale
    # y_ref:     (1, C_out, 1)       output (already in final dtype)
    # acc_ref:   (1, C_in) f32       spatial-sum accumulator (VMEM scratch)
    j = pl.program_id(1)

    @pl.when(j == 0)
    def _():
        acc_ref[...] = jnp.zeros_like(acc_ref)

    # Partial spatial sum of this chunk, accumulated in f32 without
    # materializing a full-tile f32 copy of the input.
    acc_ref[...] += jnp.sum(x_ref[...], axis=2, dtype=jnp.float32)

    @pl.when(j == pl.num_programs(1) - 1)
    def _():
        c_out = y_ref.shape[1]
        # 1x1 conv: weight already carries the 1/(H*W) mean factor.
        y = jnp.dot(acc_ref[...], w_ref[...], preferred_element_type=jnp.float32)
        y = jnp.maximum(y * scale_ref[...] + shift_ref[...], 0.0)
        # Cast the tiny (1, C_out) vector to the output dtype *before* any
        # broadcasting happens downstream (pass 2 is then a pure store stream).
        y_ref[...] = y.reshape(1, c_out, 1).astype(y_ref.dtype)


# --------------------------------------------------------------------------
# Pass 2: broadcast y over the (lane-dense) spatial dim == bilinear upsample
# of a 1x1 source with align_corners=True.
# --------------------------------------------------------------------------
def _broadcast_kernel(y_ref, o_ref):
    # y_ref: (1, C_out, 1) already in output dtype; o_ref: (1, C_out, TILE_HW)
    o_ref[...] = jnp.broadcast_to(y_ref[...], o_ref.shape)


# --------------------------------------------------------------------------
# Tiling helpers
# --------------------------------------------------------------------------
def _pick_hw_tile(hw, channels, itemsize, target_bytes=2 * 1024 * 1024):
    """Largest multiple-of-128 divisor of hw whose (channels, tile) block stays
    within ~target_bytes. Falls back to the full extent when hw is not
    128-aligned (then the block equals the full array dim, which is allowed)."""
    if hw % 128 != 0:
        return hw
    max_tile = max(128, target_bytes // max(1, channels * itemsize))
    best = 128
    t = 256
    while t <= hw and t <= max_tile:
        if hw % t == 0:
            best = t
        t += 128
    return best


def _vmem_budget(tile_bytes):
    # Double-buffered tiles + small residents, with headroom; capped well under
    # v7x's 64 MiB physical VMEM.
    return int(min(48 * 1024 * 1024, max(16 * 1024 * 1024, 8 * tile_bytes)))


# --------------------------------------------------------------------------
# Wrapper
# --------------------------------------------------------------------------
def aspp_pooling(x, conv_weight, bn_gamma, bn_beta, bn_mean, bn_var, eps=1e-5):
    """x: (N, C_in, H, W) NCHW. conv_weight: (C_out, C_in, 1, 1)."""
    n, c_in, h, w = x.shape
    c_out = conv_weight.shape[0]
    hw = h * w

    # Lane-dense layout: collapse H, W into a single trailing dim (free reshape).
    x_flat = x.reshape(n, c_in, hw)

    # Fold BN into scale/shift; fold the 1/(H*W) mean factor into the conv
    # weight so the kernel only accumulates a plain sum. All pre-cast to f32
    # once here (no per-step casts inside the kernel).
    w_t = (conv_weight.reshape(c_out, c_in).T.astype(jnp.float32) / float(hw))
    scale = (bn_gamma.astype(jnp.float32)
             / jnp.sqrt(bn_var.astype(jnp.float32) + eps)).reshape(1, c_out)
    shift = (bn_beta.astype(jnp.float32)
             - bn_mean.astype(jnp.float32) * scale[0]).reshape(1, c_out)

    itemsize = jnp.dtype(x.dtype).itemsize
    tile_in = _pick_hw_tile(hw, c_in, itemsize)
    tile_out = _pick_hw_tile(hw, c_out, itemsize)

    # ---- Pass 1: pooled + 1x1 conv + BN + ReLU -> y of shape (N, C_out, 1)
    y = pl.pallas_call(
        _pool_conv_bn_relu_kernel,
        out_shape=jax.ShapeDtypeStruct((n, c_out, 1), x.dtype),
        grid_spec=pltpu.PrefetchScalarGridSpec(
            num_scalar_prefetch=0,
            grid=(n, hw // tile_in),
            in_specs=[
                pl.BlockSpec((1, c_in, tile_in), lambda b, j: (b, 0, j)),
                pl.BlockSpec((c_in, c_out), lambda b, j: (0, 0)),
                pl.BlockSpec((1, c_out), lambda b, j: (0, 0)),
                pl.BlockSpec((1, c_out), lambda b, j: (0, 0)),
            ],
            out_specs=pl.BlockSpec((1, c_out, 1), lambda b, j: (b, 0, 0)),
            scratch_shapes=[pltpu.VMEM((1, c_in), jnp.float32)],
        ),
        compiler_params=pltpu.CompilerParams(
            dimension_semantics=("parallel", "arbitrary"),
            vmem_limit_bytes=_vmem_budget(c_in * tile_in * itemsize),
        ),
    )(x_flat, w_t, scale, shift)

    # ---- Pass 2: lane-dense broadcast write -> (N, C_out, H*W)
    out_flat = pl.pallas_call(
        _broadcast_kernel,
        out_shape=jax.ShapeDtypeStruct((n, c_out, hw), x.dtype),
        grid_spec=pltpu.PrefetchScalarGridSpec(
            num_scalar_prefetch=0,
            grid=(n, hw // tile_out),
            in_specs=[pl.BlockSpec((1, c_out, 1), lambda b, j: (b, 0, 0))],
            out_specs=pl.BlockSpec((1, c_out, tile_out), lambda b, j: (b, 0, j)),
        ),
        compiler_params=pltpu.CompilerParams(
            # Both axes are independent writes -> both v7x TensorCores get work.
            dimension_semantics=("parallel", "parallel"),
            vmem_limit_bytes=_vmem_budget(c_out * tile_out * itemsize),
        ),
    )(y)

    return out_flat.reshape(n, c_out, h, w)


# --------------------------------------------------------------------------
# Pure-JAX reference (eval-mode semantics)
# --------------------------------------------------------------------------
def _reference(x, conv_weight, bn_gamma, bn_beta, bn_mean, bn_var, eps=1e-5):
    n, c_in, h, w = x.shape
    c_out = conv_weight.shape[0]
    pooled = jnp.mean(x, axis=(2, 3))                                   # (N, C_in)
    y = pooled @ conv_weight.reshape(c_out, c_in).T                     # (N, C_out)
    y = (y - bn_mean) / jnp.sqrt(bn_var + eps) * bn_gamma + bn_beta
    y = jnp.maximum(y, 0.0)
    return jnp.broadcast_to(y.reshape(n, c_out, 1, 1), (n, c_out, h, w))


if __name__ == "__main__":
    key = jax.random.PRNGKey(0)
    k_x, k_w, k_g, k_b, k_m, k_v = jax.random.split(key, 6)

    N, C_IN, C_OUT, H, W = 2, 4, 8, 16, 16

    x = jax.random.normal(k_x, (N, C_IN, H, W), dtype=jnp.float32)
    conv_weight = jax.random.normal(k_w, (C_OUT, C_IN, 1, 1), dtype=jnp.float32) * 0.1
    bn_gamma = 1.0 + 0.1 * jax.random.normal(k_g, (C_OUT,), dtype=jnp.float32)
    bn_beta = 0.1 * jax.random.normal(k_b, (C_OUT,), dtype=jnp.float32)
    bn_mean = 0.05 * jax.random.normal(k_m, (C_OUT,), dtype=jnp.float32)
    bn_var = jnp.abs(1.0 + 0.1 * jax.random.normal(k_v, (C_OUT,), dtype=jnp.float32))

    out = aspp_pooling(x, conv_weight, bn_gamma, bn_beta, bn_mean, bn_var)
    out = jax.block_until_ready(out)

    ref = _reference(x, conv_weight, bn_gamma, bn_beta, bn_mean, bn_var)
    assert out.shape == (N, C_OUT, H, W)
    assert jnp.allclose(out, ref, atol=1e-5, rtol=1e-5)

    print("KERNEL_OK")
</pallas_src>

<mosaic_0001>
module attributes {stable_mosaic.version = 11 : i64} {
  func.func @_pool_conv_bn_relu_kernel(%arg0: i32, %arg1: i32, %arg2: memref<1x4x256xf32, #tpu.memory_space<vmem>>, %arg3: memref<4x8xf32, #tpu.memory_space<vmem>>, %arg4: memref<1x8xf32, #tpu.memory_space<vmem>>, %arg5: memref<1x8xf32, #tpu.memory_space<vmem>>, %arg6: memref<1x8x1xf32, #tpu.memory_space<vmem>>, %arg7: memref<1x4xf32, #tpu.memory_space<vmem>>) attributes {dimension_semantics = [#tpu.dimension_semantics<parallel>, #tpu.dimension_semantics<arbitrary>], iteration_bounds = array<i64: 2, 1>, scalar_prefetch = 0 : i64, scratch_operands = 1 : i64, tpu.core_type = #tpu.core_type<tc>, window_params = [{transform_indices = @transform_0, window_bounds = array<i64: 1, 4, 256>}, {pipeline_mode = #tpu.pipeline_mode<synchronous>, transform_indices = @transform_1, window_bounds = array<i64: 4, 8>}, {pipeline_mode = #tpu.pipeline_mode<synchronous>, transform_indices = @transform_2, window_bounds = array<i64: 1, 8>}, {pipeline_mode = #tpu.pipeline_mode<synchronous>, transform_indices = @transform_3, window_bounds = array<i64: 1, 8>}, {transform_indices = @transform_4, window_bounds = array<i64: 1, 8, 1>}]} {
    %c0_i32 = arith.constant 0 : i32
    %0 = arith.cmpi eq, %arg1, %c0_i32 : i32
    %1 = arith.extui %0 : i1 to i32
    %c0_i32_0 = arith.constant 0 : i32
    %2 = arith.cmpi ne, %1, %c0_i32_0 : i32
    scf.if %2 {
      %cst_9 = arith.constant 0.000000e+00 : f32
      %11 = vector.broadcast %cst_9 : f32 to vector<1x4xf32>
      %c0_10 = arith.constant 0 : index
      %c0_11 = arith.constant 0 : index
      %12 = vector.load %arg7[%c0_10, %c0_11] : memref<1x4xf32, #tpu.memory_space<vmem>>, vector<1x4xf32>
      tpu.vector_store %arg7[%c0_10, %c0_11], %11 {strides = array<i32>} : memref<1x4xf32, #tpu.memory_space<vmem>>, vector<1x4xf32>,
    } else {
    }
    %c0 = arith.constant 0 : index
    %c0_1 = arith.constant 0 : index
    %3 = vector.load %arg7[%c0, %c0_1] : memref<1x4xf32, #tpu.memory_space<vmem>>, vector<1x4xf32>
    %c0_2 = arith.constant 0 : index
    %c0_3 = arith.constant 0 : index
    %c0_4 = arith.constant 0 : index
    %4 = vector.load %arg2[%c0_2, %c0_3, %c0_4] : memref<1x4x256xf32, #tpu.memory_space<vmem>>, vector<1x4x256xf32>
    %cst = arith.constant dense<0.000000e+00> : vector<1x4xf32>
    %5 = vector.multi_reduction <add>, %4, %cst [2] : vector<1x4x256xf32> to vector<1x4xf32>
    %6 = arith.addf %3, %5 : vector<1x4xf32>
    %c0_5 = arith.constant 0 : index
    %c0_6 = arith.constant 0 : index
    %7 = vector.load %arg7[%c0_5, %c0_6] : memref<1x4xf32, #tpu.memory_space<vmem>>, vector<1x4xf32>
    tpu.vector_store %arg7[%c0_5, %c0_6], %6 {strides = array<i32>} : memref<1x4xf32, #tpu.memory_space<vmem>>, vector<1x4xf32>,
    %c0_i32_7 = arith.constant 0 : i32
    %8 = arith.cmpi eq, %arg1, %c0_i32_7 : i32
    %9 = arith.extui %8 : i1 to i32
    %c0_i32_8 = arith.constant 0 : i32
    %10 = arith.cmpi ne, %9, %c0_i32_8 : i32
    scf.if %10 {
      %c0_9 = arith.constant 0 : index
      %c0_10 = arith.constant 0 : index
      %11 = vector.load %arg7[%c0_9, %c0_10] : memref<1x4xf32, #tpu.memory_space<vmem>>, vector<1x4xf32>
      %c0_11 = arith.constant 0 : index
      %c0_12 = arith.constant 0 : index
      %12 = vector.load %arg3[%c0_11, %c0_12] : memref<4x8xf32, #tpu.memory_space<vmem>>, vector<4x8xf32>
      %cst_13 = arith.constant dense<0.000000e+00> : vector<1x8xf32>
      %13 = tpu.matmul %11, %12, %cst_13 {dimension_numbers = #tpu.dot_dimension_numbers<[1], [0], [0], [1], [0, 0, 1, 1], [], []>} : vector<1x4xf32>, vector<4x8xf32>, vector<1x8xf32> -> vector<1x8xf32>
      %c0_14 = arith.constant 0 : index
      %c0_15 = arith.constant 0 : index
      %14 = vector.load %arg4[%c0_14, %c0_15] : memref<1x8xf32, #tpu.memory_space<vmem>>, vector<1x8xf32>
      %15 = arith.mulf %13, %14 : vector<1x8xf32>
      %c0_16 = arith.constant 0 : index
      %c0_17 = arith.constant 0 : index
      %16 = vector.load %arg5[%c0_16, %c0_17] : memref<1x8xf32, #tpu.memory_space<vmem>>, vector<1x8xf32>
      %17 = arith.addf %15, %16 : vector<1x8xf32>
      %cst_18 = arith.constant 0.000000e+00 : f32
      %18 = vector.broadcast %cst_18 : f32 to vector<1x8xf32>
      %19 = arith.maximumf %17, %18 : vector<1x8xf32>
      %20 = vector.shape_cast %19 : vector<1x8xf32> to vector<1x8x1xf32>
      %c0_19 = arith.constant 0 : index
      %c0_20 = arith.constant 0 : index
      %c0_21 = arith.constant 0 : index
      %21 = vector.load %arg6[%c0_19, %c0_20, %c0_21] : memref<1x8x1xf32, #tpu.memory_space<vmem>>, vector<1x8x1xf32>
      tpu.vector_store %arg6[%c0_19, %c0_20, %c0_21], %20 {strides = array<i32>} : memref<1x8x1xf32, #tpu.memory_space<vmem>>, vector<1x8x1xf32>,
    } else {
    }
    return
  }
  func.func @transform_0(%arg0: i32, %arg1: i32) -> (i32, i32, i32) {
    %c0_i32 = arith.constant 0 : i32
    %c0_i32_0 = arith.constant 0 : i32
    return %arg0, %c0_i32, %arg1 : i32, i32, i32
  }
  func.func @transform_1(%arg0: i32, %arg1: i32) -> (i32, i32) {
    %c0_i32 = arith.constant 0 : i32
    %c0_i32_0 = arith.constant 0 : i32
    %c0_i32_1 = arith.constant 0 : i32
    return %c0_i32, %c0_i32_0 : i32, i32
  }
  func.func @transform_2(%arg0: i32, %arg1: i32) -> (i32, i32) {
    %c0_i32 = arith.constant 0 : i32
    %c0_i32_0 = arith.constant 0 : i32
    %c0_i32_1 = arith.constant 0 : i32
    return %c0_i32, %c0_i32_0 : i32, i32
  }
  func.func @transform_3(%arg0: i32, %arg1: i32) -> (i32, i32) {
    %c0_i32 = arith.constant 0 : i32
    %c0_i32_0 = arith.constant 0 : i32
    %c0_i32_1 = arith.constant 0 : i32
    return %c0_i32, %c0_i32_0 : i32, i32
  }
  func.func @transform_4(%arg0: i32, %arg1: i32) -> (i32, i32, i32) {
    %c0_i32 = arith.constant 0 : i32
    %c0_i32_0 = arith.constant 0 : i32
    %c0_i32_1 = arith.constant 0 : i32
    return %arg0, %c0_i32, %c0_i32_0 : i32, i32, i32
  }
}

</mosaic_0001>

<bundles_post_ra>
// kernel: tpu_custom_call.1
= control target key start
LH: loop header
LB: loop body
LE: loop exit
PB: predicated region body
PF: predicated region fallthrough
CT: control target
= control target key end

     0   :  { %9 = vsyncpa [#allocation4], 0  ;;  %s777_s0 = inlined_call_operand.hbm [shape: f32[2,4,256], index: 0, kind: input, shape index: {}]   ;;  %s778_s1 = inlined_call_operand.hbm [shape: f32[4,8], index: 1, kind: input, shape index: {}]   ;;  %s779_s2 = inlined_call_operand.vmem [shape: f32[1,8], index: 2, kind: input, shape index: {}]   ;;  %s780_s3 = inlined_call_operand.vmem [shape: f32[1,8], index: 3, kind: input, shape index: {}]   ;;  %s781_s4 = inlined_call_operand.vmem [shape: f32[2,8,1], index: 4, kind: output, shape index: {}]  }
   0x1   :  { %11 = vsyncpa [#allocation4 + $0x1], 0 }
   0x2   :  { %12 = vsyncpa [#allocation6], 0  ;;  %s655_s15 = smov 0   ;;  %s657_s16 = smov 0  }
   0x3   :  { %s659_s17 = smov 0   ;;  %s661_s18 = smov 0  }
   0x4   :  { %s663_s19 = smov 0   ;;  %s665_s20 = smov 0  }
   0x5 LB: > { %s423_s21 = sadd.s32 4294967295, %s625_s20   ;;  %p52_p0 = scmp.ne.s32.totalorder %s609_s16, %s605_s15  ;;  %s625_s20 = sphi %s665_s20, %s18_s20   ;;  %s621_s19 = sphi %s663_s19, %s790_s19   ;;  %s617_s18 = sphi %s661_s18, %s789_s18   ;;  %s613_s17 = sphi %s659_s17, %s788_s17   ;;  %s609_s16 = sphi %s657_s16, %s787_s16   ;;  %s605_s15 = sphi %s655_s15, %s786_s15  }
   0x6   : > { %p685_p1 = scmp.eq.s32.totalorder %s423_s21, 0  ;;  %p425_p2 = scmp.ge.s32.totalorder %s625_s20, 1 }
   0x7   : > { %p152_p3 = scmp.lt.s32.totalorder %s625_s20, 3  ;;  %s164_s26 = sshll.u32 %s778_s1, 4  ;;  %s165_s26 = int_to_ptr.hbm [resolvable:$true] %s164_s26 }
   0x8   : > { %p693_p4 = por %p685_p1, %p52_p0  ;;  %s627_s28 = smov [#allocation5]  }
   0x9   : > { %p700_p5 = pnand %p425_p2, %p152_p3  ;;  %s166_s29 = sshll.u32 %s627_s28, 4  ;;  %s167_s29 = int_to_ptr.vmem [resolvable:$true] %s166_s29 }
   0xa   : > { %s30_s30 = sadd.s32 1, %s621_s19  ;;  %p46_p9 = scmp.ne.s32.totalorder %s613_s17, %s609_s16 }
   0xb   : > { %p446_p6 = pneg %p700_p5  ;;  %p32_p8 = scmp.ge.s32.totalorder %s30_s30, 2 }
   0xc   : > { %p47_p10 = scmp.eq.s32.totalorder %s625_s20, 0  ;;  %s39_s5 = sadd.s32 1, %s613_s17 }
   0xd   : > { %p447_p7 = pnand %p446_p6, %p685_p1  ;;  %s792_s30 = smov (%p32_p8, %s30_s30), 0 }
   0xe   : > { %p715_p11 = por %p47_p10, %p46_p9  ;;  %s34_s7 = ssub.s32 %s621_s19, %s792_s30 }
   0xf   : > { %449 = dma.hbm_to_vmem [thread:$0]  (!%p447_p7), %s165_s26, 64, %s167_s29, [#allocation6]  }
  0x10   : > { %s183_s8 = sand.u32 1, %s613_s17   ;;  %p37_p12 = scmp.eq.s32.totalorder %s34_s7, 0 }
  0x11   : > { %p455_p13 = scmp.lt.s32.totalorder %s625_s20, 2  ;;  %s428_s9 = sshll.u32 %s183_s8, 3 }
  0x12   : > { %s439_s10 = sshll.u32 %s621_s19, 3  ;;  %s187_s21 = scalar_lea.vmem [#allocation3], %s428_s9 }
  0x13   : > { %s725_s11 = scalar_select %p37_p12, %s613_s17, %s39_s5  }
  0x14   : > { %s194_s14 = scalar_lea.hbm %s777_s0, %s439_s10  ;;  %s198_s24 = sshll.u32 %s187_s21, 4  ;;  %s199_s24 = int_to_ptr.vmem [resolvable:$true] %s198_s24 }
  0x15   : > { %s196_s15 = sshll.u32 %s194_s14, 4  ;;  %p451_p0 = pnand %p455_p13, %p715_p11  ;;  %s197_s15 = int_to_ptr.hbm [resolvable:$true] %s196_s15 }
  0x16   : > { %s184_s25 = scalar_lea.sflag [#allocation4], %s183_s8  ;;  %207 = sbr.rel (%p700_p5) target bundleno = 548 (0x224), region = 36 }
  0x17   : > { %453 = dma.hbm_to_vmem [thread:$0]  (!%p451_p0), %s197_s15, 128, %s199_s24, %s184_s25  }
  0x18   : > { %s209_s26 = sand.u32 (!%p700_p5), 1, %s609_s16  }
  0x19   : > { %s432_s28 = sshll.u32 (!%p700_p5), %s209_s26, 3  ;;  %s210_s29 = scalar_lea.sflag (!%p700_p5), [#allocation4], %s209_s26 }
  0x1a   : > { %s213_s5 = scalar_lea.vmem (!%p700_p5), [#allocation3], %s432_s28 }
  0x1b   : > { %596 = dma.done.wait (%p693_p4), %s210_s29, 128  }
  0x1c   : > { %598 = vsyncadd (%p693_p4), %s210_s29, 4294967168 }
  0x1d   : > { %600 = dma.done.wait (%p685_p1), [#allocation6], 64  }
  0x1e   : > { %602 = vsyncadd (%p685_p1), [#allocation6], 4294967232  ;;  %v255_v0 = vld [vmem:[%s213_s5] sm:$0xff]  ;;  %vm262_vm0 = vcmask 1043456   ;;  %v628_v6 = vmov 0   ;;  %vm252_vm1 = vcmask 24576   ;;  %v284_v15 = vlaneseq }
  0x1f   : > { %257 = vst [vmem:[#allocation1] ss:$2 sm:$0xff] %v255_v0  ;;  %508 = vset.pattern.permute.xlu0 %v628_v6  ;;  %v629_v7 = vmov 0.0   ;;  %v295_v14 = vld [vmem:[#allocation5] sm:$0xf]  ;;  %vm296_vm2 = vcmask 31744  }
  0x20   : > { %253 = vst.msk [vmem:[#allocation2] sm:$0x1] %vm252_vm1, %v629_v7  ;;  %435 = vmatpush.msk.msra.mxu0 %vm262_vm0, %v295_v14  ;;  %v285_v16 = vand.u32 127, %v284_v15  ;;  %v330_v22 = vshrl.u32 %v284_v15, 7  ;;  %v323_v23 = vld [vmem:[%s779_s2] sm:$0x1] }
  0x21   : > { %v325_v25 = vld [vmem:[%s780_s3] sm:$0x1]  ;;  %p244_p1 = scmp.lt.s32.totalorder %s617_s18, 1  ;;  %vm335_vm3 = vcmask 7168  }
  0x22   : > { %509 = vset.pattern.permute.xlu1 %v330_v22 }
  0x23   : > { %s794_s18 = smov (!%p244_p1, %s617_s18), 1 }
  0x24   : > { %s434_s7 = sshll.u32 %s794_s18, 3 }
  0x25   : > { %s247_s10 = scalar_lea.vmem %s781_s4, %s434_s7 }
  0x26   : > { %v258_v1 = vld.sshfl [vmem:[#allocation1] sm:$0xff pattern:$0x75316420]  ;;  %v259_v2 = vld.sshfl [vmem:[#allocation1 + $0x8] sm:$0xff pattern:$0x75316420] }
  0x27   : > { %v263_v3 = vsel %vm262_vm0, %v258_v1, 0.0  ;;  %v264_v4 = vsel %vm262_vm0, %v259_v2, 0.0  ;;  %v254_v18 = vld [vmem:[#allocation2] sm:$0x1] }
  0x28   : > { %v265_v5 = vadd.f32 %v264_v4, %v263_v3 }
  0x2a   : > { %266 = vadd.xlane.f32.xlu0 %v265_v5 }
  0x9d   : > { %v267_v8 = vpop.xlane.xlu0 %266 }
  0x9e   : > { %v269_v9 = vperm.slane %v267_v8, 0  ;;  %v270_v10 = vperm.slane %v267_v8, 1  ;;  %v271_v11 = vperm.slane %v267_v8, 2  ;;  %v272_v12 = vperm.slane %v267_v8, 3 }
  0xa0   : > { %273 = vst [vmem:[#allocation1] ss:$9 sm:$0xff] %v269_v9 }
  0xa1   : > { %275 = vst [vmem:[#allocation1 + $0x1] ss:$9 sm:$0xff] %v270_v10 }
  0xa2   : > { %277 = vst [vmem:[#allocation1 + $0x2] ss:$9 sm:$0xff] %v271_v11 }
  0xa3   : > { %279 = vst [vmem:[#allocation1 + $0x3] ss:$9 sm:$0xff] %v272_v12 }
  0xaa   : > { %v280_v13 = vld [vmem:[#allocation1] sm:$0xff] }
  0xab   : > { %282 = vperm.xlu0 %508, %v280_v13  }
  0xb3   : > { %510 = vset.pattern.permute.xlu0 %v330_v22 }
 0x11d   : > { %v283_v17 = vpop.permute.xlu0 %282 }
 0x11e   : > { %v286_v19 = vperm.slane %v283_v17, %v285_v16 }
 0x120   : > { %v288_v20 = vadd.f32 %v286_v19, %v254_v18 }
 0x122   : > { %290 = vst.msk [vmem:[#allocation2] sm:$0x1] %vm252_vm1, %v288_v20 }
 0x129   : > { %v294_v21 = vld [vmem:[#allocation2] sm:$0x1] }
 0x12a   : > { %436 = vmatmul.msk.f32.vlgmr.msra.gmra.mxu0 %vm296_vm2, %v294_v21 }
 0x1a7   : > { %v320_v24 = vpop.f32.mrf.mxu0 }
 0x1a8   : > { %v324_v26 = vmul.f32 %v323_v23, %v320_v24 }
 0x1aa   : > { %v326_v27 = vadd.f32 %v325_v25, %v324_v26 }
 0x1ac   : > { %v327_v28 = vmax.f32 %v326_v27, 0.0 }
 0x1ae   : > { %v328_v29 = vperm.slane %v327_v28, 0 }
 0x1b0   : > { %333 = vperm.xlu1 %509, %v328_v29  }
 0x222   : > { %v334_v30 = vpop.permute.xlu1 %333 }
 0x223   : > { %336 = vst.msk [vmem:[%s247_s10] sm:$0xff] %vm335_vm3, %v334_v30 }
 0x224 PF: > { %s18_s20 = sadd.s32 1, %s625_s20   ;;  %s786_s15 = smov %s609_s16 }
 0x225   : > { %p15_p2 = scmp.ge.s32.totalorder %s18_s20, 4   ;;  %s787_s16 = smov %s613_s17 }
 0x226   : > { %s788_s17 = smov %s725_s11  ;;  %s789_s18 = smov %s621_s19 }
 0x227   : > { %s790_s19 = smov %s792_s30  ;;  %17 = sbr.rel (!%p15_p2) target bundleno = 5 (0x5), region = 91 }
 0x22c   :  { %356 = vsyncpa [#allocation4], 1 }
 0x22d   :  { %358 = vsyncpa [#allocation4 + $0x1], 1 }
 0x22e   :  { %359 = vsyncpa [#allocation6], 1 }

</bundles_post_ra>
